<compile_context>
chip_gen: v7x
topology: tpu7x:2x2x1
jax: 0.10.0
libtpu: 0.0.40
codegen_flags: <defaults>
</compile_context>

<pallas_src>
import jax
import jax.numpy as jnp
from jax.experimental import pallas as pl
from jax.experimental.pallas import tpu as pltpu


def dqn_kernel(x_ref, w1_ref, b1_ref, w2_ref, b2_ref, w3_ref, b3_ref, o_ref):
    # One (block_b, num_obs) row-block of the batch; all three layers fused so
    # hidden activations never leave VMEM/vregs.  bf16 operands, f32 accumulate.
    x = x_ref[...].astype(jnp.bfloat16)                                 # in-kernel cast
    h1 = jnp.dot(x, w1_ref[...], preferred_element_type=jnp.float32) + b1_ref[...]
    h1 = jnp.maximum(h1, 0.0).astype(jnp.bfloat16)
    h2 = jnp.dot(h1, w2_ref[...], preferred_element_type=jnp.float32) + b2_ref[...]
    h2 = jnp.maximum(h2, 0.0).astype(jnp.bfloat16)
    y = jnp.dot(h2, w3_ref[...], preferred_element_type=jnp.float32) + b3_ref[...]
    o_ref[...] = y.astype(o_ref.dtype)


def _pad_rows(a, rows):
    pad = rows - a.shape[0]
    if pad <= 0:
        return a
    return jnp.pad(a, ((0, pad), (0, 0)))


def _choose_block_b(batch):
    # Big blocks for big batches (amortize per-step overhead), but keep the grid
    # length >= 2 when possible so both v7x TensorCores get work.
    for bb in (1024, 512, 256):
        if batch >= 2 * bb:
            return bb
    return 128


def dqn_forward(x, w1, b1, w2, b2, w3, b3, *, block_b=None):
    """x: (B, num_obs) f32; weights (in, out) f32; biases (1, out) f32."""
    batch, num_obs = x.shape
    hidden = w1.shape[1]
    num_actions = w3.shape[1]

    if block_b is None:
        block_b = _choose_block_b(batch)

    # Only the batch dimension is padded (to a multiple of block_b); feature
    # dims stay at their true sizes.
    batch_p = pl.cdiv(batch, block_b) * block_b
    x_p = _pad_rows(x, batch_p)

    # Small, one-time weight casts (weights are DMA'd once and stay resident).
    w1_bf = w1.astype(jnp.bfloat16)
    w2_bf = w2.astype(jnp.bfloat16)
    w3_bf = w3.astype(jnp.bfloat16)

    flops = 2 * batch * (num_obs * hidden + hidden * hidden + hidden * num_actions)
    bytes_accessed = (
        x.size * 4                                   # f32 input read
        + (w1.size + w2.size + w3.size) * 2          # bf16 weights
        + (b1.size + b2.size + b3.size) * 4          # f32 biases
        + batch * num_actions * 4                    # f32 output write
    )
    cost = pl.CostEstimate(flops=flops, transcendentals=0,
                           bytes_accessed=bytes_accessed)

    grid = (batch_p // block_b,)
    out = pl.pallas_call(
        dqn_kernel,
        out_shape=jax.ShapeDtypeStruct((batch_p, num_actions), jnp.float32),
        grid_spec=pltpu.PrefetchScalarGridSpec(
            num_scalar_prefetch=0,
            grid=grid,
            in_specs=[
                pl.BlockSpec((block_b, num_obs), lambda i: (i, 0)),     # x row block (unpadded feats)
                pl.BlockSpec((num_obs, hidden), lambda i: (0, 0)),      # w1 (resident)
                pl.BlockSpec((1, hidden), lambda i: (0, 0)),            # b1
                pl.BlockSpec((hidden, hidden), lambda i: (0, 0)),       # w2
                pl.BlockSpec((1, hidden), lambda i: (0, 0)),            # b2
                pl.BlockSpec((hidden, num_actions), lambda i: (0, 0)),  # w3 (unpadded)
                pl.BlockSpec((1, num_actions), lambda i: (0, 0)),       # b3
            ],
            out_specs=pl.BlockSpec((block_b, num_actions), lambda i: (i, 0)),
        ),
        compiler_params=pltpu.CompilerParams(
            dimension_semantics=("parallel",),   # shard row blocks across TCs (v7x)
        ),
        cost_estimate=cost,
    )(x_p, w1_bf, b1, w2_bf, b2, w3_bf, b3)

    return out[:batch] if batch_p != batch else out


def init_params(key, num_obs, num_actions, hidden=128):
    """Deterministic init mimicking PyTorch Linear default (uniform +/- 1/sqrt(fan_in))."""
    ks = jax.random.split(key, 6)

    def linear(kw, kb, fan_in, fan_out):
        bound = 1.0 / jnp.sqrt(fan_in)
        w = jax.random.uniform(kw, (fan_in, fan_out), jnp.float32, -bound, bound)
        b = jax.random.uniform(kb, (1, fan_out), jnp.float32, -bound, bound)
        return w, b

    w1, b1 = linear(ks[0], ks[1], num_obs, hidden)
    w2, b2 = linear(ks[2], ks[3], hidden, hidden)
    w3, b3 = linear(ks[4], ks[5], hidden, num_actions)
    return w1, b1, w2, b2, w3, b3


def dqn_reference(x, w1, b1, w2, b2, w3, b3):
    # Same bf16-operand / f32-accumulate recipe as the kernel.
    # (vs. the f32 PyTorch module this carries ~3-significant-digit bf16 error,
    #  which is fine for DQN inference.)
    xb = x.astype(jnp.bfloat16)
    h1 = jnp.maximum(
        jnp.dot(xb, w1.astype(jnp.bfloat16), preferred_element_type=jnp.float32) + b1, 0.0)
    h2 = jnp.maximum(
        jnp.dot(h1.astype(jnp.bfloat16), w2.astype(jnp.bfloat16),
                preferred_element_type=jnp.float32) + b2, 0.0)
    return jnp.dot(h2.astype(jnp.bfloat16), w3.astype(jnp.bfloat16),
                   preferred_element_type=jnp.float32) + b3


if __name__ == "__main__":
    key = jax.random.PRNGKey(0)
    num_obs, num_actions = 4, 2           # CartPole: 4 observations, 2 actions
    batch = 256                           # -> block_b=128, grid=(2,), both v7x TCs busy

    kx, kp = jax.random.split(key)
    x = jax.random.normal(kx, (batch, num_obs), jnp.float32)
    params = init_params(kp, num_obs, num_actions)

    out = dqn_forward(x, *params)
    out = jax.block_until_ready(out)

    ref = dqn_reference(x, *params)
    assert out.shape == (batch, num_actions)
    assert jnp.allclose(out, ref, atol=2e-2, rtol=2e-2), "mismatch vs reference"

    print("KERNEL_OK")
</pallas_src>

<mosaic_0001>
module attributes {stable_mosaic.version = 11 : i64} {
  func.func @dqn_kernel(%arg0: i32, %arg1: memref<128x4xf32, #tpu.memory_space<vmem>>, %arg2: memref<4x128xbf16, #tpu.memory_space<vmem>>, %arg3: memref<1x128xf32, #tpu.memory_space<vmem>>, %arg4: memref<128x128xbf16, #tpu.memory_space<vmem>>, %arg5: memref<1x128xf32, #tpu.memory_space<vmem>>, %arg6: memref<128x2xbf16, #tpu.memory_space<vmem>>, %arg7: memref<1x2xf32, #tpu.memory_space<vmem>>, %arg8: memref<128x2xf32, #tpu.memory_space<vmem>>) attributes {dimension_semantics = [#tpu.dimension_semantics<parallel>], iteration_bounds = array<i64: 2>, scalar_prefetch = 0 : i64, scratch_operands = 0 : i64, tpu.core_type = #tpu.core_type<tc>, window_params = [{transform_indices = @transform_0, window_bounds = array<i64: 128, 4>}, {pipeline_mode = #tpu.pipeline_mode<synchronous>, transform_indices = @transform_1, window_bounds = array<i64: 4, 128>}, {pipeline_mode = #tpu.pipeline_mode<synchronous>, transform_indices = @transform_2, window_bounds = array<i64: 1, 128>}, {pipeline_mode = #tpu.pipeline_mode<synchronous>, transform_indices = @transform_3, window_bounds = array<i64: 128, 128>}, {pipeline_mode = #tpu.pipeline_mode<synchronous>, transform_indices = @transform_4, window_bounds = array<i64: 1, 128>}, {pipeline_mode = #tpu.pipeline_mode<synchronous>, transform_indices = @transform_5, window_bounds = array<i64: 128, 2>}, {pipeline_mode = #tpu.pipeline_mode<synchronous>, transform_indices = @transform_6, window_bounds = array<i64: 1, 2>}, {transform_indices = @transform_7, window_bounds = array<i64: 128, 2>}]} {
    %c0 = arith.constant 0 : index
    %c0_0 = arith.constant 0 : index
    %0 = vector.load %arg1[%c0, %c0_0] : memref<128x4xf32, #tpu.memory_space<vmem>>, vector<128x4xf32>
    %1 = arith.truncf %0 : vector<128x4xf32> to vector<128x4xbf16>
    %c0_1 = arith.constant 0 : index
    %c0_2 = arith.constant 0 : index
    %2 = vector.load %arg2[%c0_1, %c0_2] : memref<4x128xbf16, #tpu.memory_space<vmem>>, vector<4x128xbf16>
    %cst = arith.constant dense<0.000000e+00> : vector<128x128xf32>
    %3 = tpu.matmul %1, %2, %cst {dimension_numbers = #tpu.dot_dimension_numbers<[1], [0], [0], [1], [0, 0, 1, 1], [], []>} : vector<128x4xbf16>, vector<4x128xbf16>, vector<128x128xf32> -> vector<128x128xf32>
    %c0_3 = arith.constant 0 : index
    %c0_4 = arith.constant 0 : index
    %4 = vector.load %arg3[%c0_3, %c0_4] : memref<1x128xf32, #tpu.memory_space<vmem>>, vector<1x128xf32>
    %5 = vector.broadcast %4 : vector<1x128xf32> to vector<128x128xf32>
    %6 = arith.addf %3, %5 : vector<128x128xf32>
    %cst_5 = arith.constant 0.000000e+00 : f32
    %7 = vector.broadcast %cst_5 : f32 to vector<128x128xf32>
    %8 = arith.maximumf %6, %7 : vector<128x128xf32>
    %9 = arith.truncf %8 : vector<128x128xf32> to vector<128x128xbf16>
    %c0_6 = arith.constant 0 : index
    %c0_7 = arith.constant 0 : index
    %10 = vector.load %arg4[%c0_6, %c0_7] : memref<128x128xbf16, #tpu.memory_space<vmem>>, vector<128x128xbf16>
    %cst_8 = arith.constant dense<0.000000e+00> : vector<128x128xf32>
    %11 = tpu.matmul %9, %10, %cst_8 {dimension_numbers = #tpu.dot_dimension_numbers<[1], [0], [0], [1], [0, 0, 1, 1], [], []>} : vector<128x128xbf16>, vector<128x128xbf16>, vector<128x128xf32> -> vector<128x128xf32>
    %c0_9 = arith.constant 0 : index
    %c0_10 = arith.constant 0 : index
    %12 = vector.load %arg5[%c0_9, %c0_10] : memref<1x128xf32, #tpu.memory_space<vmem>>, vector<1x128xf32>
    %13 = vector.broadcast %12 : vector<1x128xf32> to vector<128x128xf32>
    %14 = arith.addf %11, %13 : vector<128x128xf32>
    %cst_11 = arith.constant 0.000000e+00 : f32
    %15 = vector.broadcast %cst_11 : f32 to vector<128x128xf32>
    %16 = arith.maximumf %14, %15 : vector<128x128xf32>
    %17 = arith.truncf %16 : vector<128x128xf32> to vector<128x128xbf16>
    %c0_12 = arith.constant 0 : index
    %c0_13 = arith.constant 0 : index
    %18 = vector.load %arg6[%c0_12, %c0_13] : memref<128x2xbf16, #tpu.memory_space<vmem>>, vector<128x2xbf16>
    %cst_14 = arith.constant dense<0.000000e+00> : vector<128x2xf32>
    %19 = tpu.matmul %17, %18, %cst_14 {dimension_numbers = #tpu.dot_dimension_numbers<[1], [0], [0], [1], [0, 0, 1, 1], [], []>} : vector<128x128xbf16>, vector<128x2xbf16>, vector<128x2xf32> -> vector<128x2xf32>
    %c0_15 = arith.constant 0 : index
    %c0_16 = arith.constant 0 : index
    %20 = vector.load %arg7[%c0_15, %c0_16] : memref<1x2xf32, #tpu.memory_space<vmem>>, vector<1x2xf32>
    %21 = vector.broadcast %20 : vector<1x2xf32> to vector<128x2xf32>
    %22 = arith.addf %19, %21 : vector<128x2xf32>
    %c0_17 = arith.constant 0 : index
    %c0_18 = arith.constant 0 : index
    %23 = vector.load %arg8[%c0_17, %c0_18] : memref<128x2xf32, #tpu.memory_space<vmem>>, vector<128x2xf32>
    tpu.vector_store %arg8[%c0_17, %c0_18], %22 {strides = array<i32>} : memref<128x2xf32, #tpu.memory_space<vmem>>, vector<128x2xf32>,
    return
  }
  func.func @transform_0(%arg0: i32) -> (i32, i32) {
    %c0_i32 = arith.constant 0 : i32
    %c0_i32_0 = arith.constant 0 : i32
    return %arg0, %c0_i32 : i32, i32
  }
  func.func @transform_1(%arg0: i32) -> (i32, i32) {
    %c0_i32 = arith.constant 0 : i32
    %c0_i32_0 = arith.constant 0 : i32
    %c0_i32_1 = arith.constant 0 : i32
    return %c0_i32, %c0_i32_0 : i32, i32
  }
  func.func @transform_2(%arg0: i32) -> (i32, i32) {
    %c0_i32 = arith.constant 0 : i32
    %c0_i32_0 = arith.constant 0 : i32
    %c0_i32_1 = arith.constant 0 : i32
    return %c0_i32, %c0_i32_0 : i32, i32
  }
  func.func @transform_3(%arg0: i32) -> (i32, i32) {
    %c0_i32 = arith.constant 0 : i32
    %c0_i32_0 = arith.constant 0 : i32
    %c0_i32_1 = arith.constant 0 : i32
    return %c0_i32, %c0_i32_0 : i32, i32
  }
  func.func @transform_4(%arg0: i32) -> (i32, i32) {
    %c0_i32 = arith.constant 0 : i32
    %c0_i32_0 = arith.constant 0 : i32
    %c0_i32_1 = arith.constant 0 : i32
    return %c0_i32, %c0_i32_0 : i32, i32
  }
  func.func @transform_5(%arg0: i32) -> (i32, i32) {
    %c0_i32 = arith.constant 0 : i32
    %c0_i32_0 = arith.constant 0 : i32
    %c0_i32_1 = arith.constant 0 : i32
    return %c0_i32, %c0_i32_0 : i32, i32
  }
  func.func @transform_6(%arg0: i32) -> (i32, i32) {
    %c0_i32 = arith.constant 0 : i32
    %c0_i32_0 = arith.constant 0 : i32
    %c0_i32_1 = arith.constant 0 : i32
    return %c0_i32, %c0_i32_0 : i32, i32
  }
  func.func @transform_7(%arg0: i32) -> (i32, i32) {
    %c0_i32 = arith.constant 0 : i32
    %c0_i32_0 = arith.constant 0 : i32
    return %arg0, %c0_i32 : i32, i32
  }
}

</mosaic_0001>

<bundles_post_ra>
// kernel: tpu_custom_call.1
= control target key start
LH: loop header
LB: loop body
LE: loop exit
PB: predicated region body
PF: predicated region fallthrough
CT: control target
= control target key end

     0   :  { %s1132_s24 = smov 0   ;;  %s1276_s0 = inlined_call_operand.vmem [shape: f32[256,4], index: 0, kind: input, shape index: {}]   ;;  %s1277_s1 = inlined_call_operand.vmem [shape: bf16[4,128], index: 1, kind: input, shape index: {}]   ;;  %s1278_s2 = inlined_call_operand.vmem [shape: f32[1,128], index: 2, kind: input, shape index: {}]   ;;  %s1279_s3 = inlined_call_operand.vmem [shape: bf16[128,128], index: 3, kind: input, shape index: {}]   ;;  %s1280_s4 = inlined_call_operand.vmem [shape: f32[1,128], index: 4, kind: input, shape index: {}]   ;;  %s1281_s5 = inlined_call_operand.vmem [shape: bf16[128,2], index: 5, kind: input, shape index: {}]   ;;  %s1282_s6 = inlined_call_operand.vmem [shape: f32[1,2], index: 6, kind: input, shape index: {}]   ;;  %s1283_s7 = inlined_call_operand.vmem [shape: f32[256,2], index: 7, kind: output, shape index: {}]  }
   0x1 LB: > { %s898_s25 = sadd.s32 4294967295, %s1090_s24   ;;  %p902_p0 = scmp.ge.s32.totalorder %s1090_s24, 1  ;;  %s1090_s24 = sphi %s1132_s24, %s17_s24  }
   0x2   : > { %p238_p1 = scmp.lt.s32.totalorder %s1090_s24, 3 }
   0x4   : > { %p239_p2 = pnand %p902_p0, %p238_p1 }
   0x5   : > { %v307_v0 = vld [vmem:[%s1277_s1] sm:$0x3] (!%p239_p2)  ;;  %vm340_vm0 = vcmask (!%p239_p2), 1041408   ;;  %s903_s28 = sshll.u32 (!%p239_p2), %s898_s25, 4  ;;  %v1069_v3 = vld [vmem:[%s1279_s3 + $0x8] sm:$0xff] (!%p239_p2)   ;;  %v1070_v4 = vld [vmem:[%s1279_s3 + $0x10] sm:$0xff] (!%p239_p2)  }
   0x6   : > { %242 = sbr.rel (%p239_p2) target bundleno = 706 (0x2c2), region = 48  ;;  %v1068_v1 = vld [vmem:[%s1279_s3] sm:$0xff] (!%p239_p2)   ;;  %1059 = vmatprep.subr.msk.bf16.mxu0 (!%p239_p2), %vm340_vm0, %v307_v0  ;;  %v342_v2 = vsel (!%p239_p2), %vm340_vm0, %v307_v0, 0  ;;  %p271_p3 = scmp.lt.s32.totalorder (!%p239_p2), %s903_s28, 31  ;;  %v1071_v5 = vld [vmem:[%s1279_s3 + $0x18] sm:$0xff] (!%p239_p2)   ;;  %vm315_vm1 = vcmask (!%p239_p2), 31744  }
   0x7   : > { %978 = vmatpush3.bf16.msra.mxu0 (!%p239_p2), %v342_v2  ;;  %995 = vmatprep.subr.bf16.mxu1 (!%p239_p2), %v1068_v1  ;;  %v1072_v15 = vld [vmem:[%s1279_s3 + $0x20] sm:$0xff] (!%p239_p2)   ;;  %v1073_v20 = vld [vmem:[%s1279_s3 + $0x28] sm:$0xff] (!%p239_p2)   ;;  %v1074_v32 = vld [vmem:[%s1279_s3 + $0x30] sm:$0xff] (!%p239_p2)   ;;  %vm825_vm2 = vcmask (!%p239_p2), 15360  }
   0x8   : > { %996 = vmatpush3.bf16.msra.mxu1 (!%p239_p2), %v1068_v1  ;;  %v1075_v33 = vld [vmem:[%s1279_s3 + $0x38] sm:$0xff] (!%p239_p2)   ;;  %v1076_v34 = vld [vmem:[%s1281_s5] sm:$0xff] (!%p239_p2)   ;;  %v1077_v35 = vld [vmem:[%s1281_s5 + $0x8] sm:$0xff] (!%p239_p2)  }
   0x9   : > { %997 = vmatprep.subr.bf16.mxu1 (!%p239_p2), %v1069_v3  ;;  %1027 = vmatprep.subr.bf16.mxu0 (!%p239_p2), %v1076_v34  ;;  %v1078_v36 = vld [vmem:[%s1281_s5 + $0x10] sm:$0xff] (!%p239_p2)   ;;  %v1079_v37 = vld [vmem:[%s1281_s5 + $0x18] sm:$0xff] (!%p239_p2)   ;;  %v1080_v38 = vld [vmem:[%s1281_s5 + $0x20] sm:$0xff] (!%p239_p2)  }
   0xa   : > { %v1081_v39 = vld [vmem:[%s1281_s5 + $0x28] sm:$0xff] (!%p239_p2)   ;;  %v907_v40 = vld [vmem:[%s1278_s2] ss:$0 sm:$0xff] (!%p239_p2) }
   0xc   : > { %998 = vmatpush3.bf16.msra.mxu1 (!%p239_p2), %v1069_v3 }
   0xd   : > { %s1285_s28 = smov (!%p271_p3, %s903_s28), 31  ;;  %999 = vmatprep.subr.bf16.mxu1 %v1070_v4 }
   0xe   : > { %s904_s12 = sshll.u32 %s1285_s28, 3 }
   0xf   : > { %s1160_s15 = scalar_lea.vmem %s1276_s0, %s904_s12  ;;  %s1239_s9 = scalar_lea.vmem %s1283_s7, %s904_s12 }
  0x10   : > { %v283_v6 = vld [vmem:[%s1160_s15] sm:$0xff]  ;;  %v284_v7 = vld [vmem:[%s1160_s15 + $0x8] sm:$0xff]  ;;  %v285_v8 = vld [vmem:[%s1160_s15 + $0x10] sm:$0xff]  ;;  %1000 = vmatpush3.bf16.msra.mxu1 %v1070_v4 }
  0x11   : > { %v299_v9 = vpack.c.bf16 %v284_v7, %v283_v6  ;;  %v286_v10 = vld [vmem:[%s1160_s15 + $0x18] sm:$0xff]  ;;  %v287_v11 = vld [vmem:[%s1160_s15 + $0x20] sm:$0xff]  ;;  %v288_v12 = vld [vmem:[%s1160_s15 + $0x28] sm:$0xff]  ;;  %1001 = vmatprep.subr.bf16.mxu1 %v1071_v5 }
  0x12   : > { %v300_v13 = vpack.c.bf16 %v286_v10, %v285_v8  ;;  %v301_v14 = vpack.c.bf16 %v288_v12, %v287_v11  ;;  %v289_v16 = vld [vmem:[%s1160_s15 + $0x30] sm:$0xff]  ;;  %v290_v17 = vld [vmem:[%s1160_s15 + $0x38] sm:$0xff]  ;;  %v291_v18 = vld [vmem:[%s1160_s15 + $0x40] sm:$0xff] }
  0x13   : > { %979 = vmatprep.mubr.msk.bf16.mxu0 %vm315_vm1, %v299_v9  ;;  %v292_v19 = vld [vmem:[%s1160_s15 + $0x48] sm:$0xff]  ;;  %v302_v21 = vpack.c.bf16 %v290_v17, %v289_v16  ;;  %v293_v23 = vld [vmem:[%s1160_s15 + $0x50] sm:$0xff]  ;;  %v294_v24 = vld [vmem:[%s1160_s15 + $0x58] sm:$0xff] }
  0x14   : > { %980 = vmatmul.mubr.msk.bf16.vlgmr.msra.gmra.mrb[0].mxu0 %vm315_vm1, %v300_v13  ;;  %1002 = vmatpush3.bf16.msra.mxu1 %v1071_v5  ;;  %v303_v22 = vpack.c.bf16 %v292_v19, %v291_v18  ;;  %v295_v25 = vld [vmem:[%s1160_s15 + $0x60] sm:$0xff]  ;;  %v296_v26 = vld [vmem:[%s1160_s15 + $0x68] sm:$0xff]  ;;  %v304_v27 = vpack.c.bf16 %v294_v24, %v293_v23  ;;  %v297_v29 = vld [vmem:[%s1160_s15 + $0x70] sm:$0xff] }
  0x15   : > { %983 = vmatprep.mubr.msk.bf16.mxu0 %vm315_vm1, %v301_v14  ;;  %1003 = vmatprep.subr.bf16.mxu1 %v1072_v15  ;;  %v305_v28 = vpack.c.bf16 %v296_v26, %v295_v25  ;;  %v298_v30 = vld [vmem:[%s1160_s15 + $0x78] sm:$0xff] }
  0x16   : > { %v306_v31 = vpack.c.bf16 %v298_v30, %v297_v29  ;;  %1028 = vmatpush3.bf16.msra.mxu0 %v1076_v34  ;;  %v1083_v34 = vld [vmem:[%s1281_s5 + $0x38] sm:$0xff]  }
  0x17   : > { %1029 = vmatprep.subr.bf16.mxu0 %v1077_v35 }
  0x18   : > { %1004 = vmatpush3.bf16.msra.mxu1 %v1072_v15 }
  0x19   : > { %1005 = vmatprep.subr.bf16.mxu1 %v1073_v20 }
  0x1a   : > { %1030 = vmatpush3.bf16.msra.mxu0 %v1077_v35  ;;  %v916_v35 = vld [vmem:[%s1280_s4] ss:$0 sm:$0xff] }
  0x1b   : > { %1031 = vmatprep.subr.bf16.mxu0 %v1078_v36 }
  0x1c   : > { %984 = vmatmul.mubr.msk.bf16.gmra.mrb[4].mxu0 %vm315_vm1, %v302_v21  ;;  %1006 = vmatpush3.bf16.msra.mxu1 %v1073_v20 }
  0x1d   : > { %987 = vmatprep.mubr.msk.bf16.mxu0 %vm315_vm1, %v303_v22  ;;  %1007 = vmatprep.subr.bf16.mxu1 %v1074_v32 }
  0x1e   : > { %1032 = vmatpush3.bf16.msra.mxu0 %v1078_v36 }
  0x1f   : > { %1033 = vmatprep.subr.bf16.mxu0 %v1079_v37 }
  0x20   : > { %1008 = vmatpush3.bf16.msra.mxu1 %v1074_v32 }
  0x21   : > { %1009 = vmatprep.subr.bf16.mxu1 %v1075_v33 }
  0x22   : > { %1034 = vmatpush3.bf16.msra.mxu0 %v1079_v37 }
  0x23   : > { %1035 = vmatprep.subr.bf16.mxu0 %v1080_v38 }
  0x24   : > { %988 = vmatmul.mubr.msk.bf16.gmra.mrb[8].mxu0 %vm315_vm1, %v304_v27  ;;  %1010 = vmatpush3.bf16.msra.mxu1 %v1075_v33  ;;  %v1082_v33 = vld [vmem:[%s1281_s5 + $0x30] sm:$0xff]  }
  0x25   : > { %991 = vmatprep.mubr.msk.bf16.mxu0 %vm315_vm1, %v305_v28 }
  0x26   : > { %1036 = vmatpush3.bf16.msra.mxu0 %v1080_v38 }
  0x27   : > { %1037 = vmatprep.subr.bf16.mxu0 %v1081_v39 }
  0x2a   : > { %1038 = vmatpush3.bf16.msra.mxu0 %v1081_v39 }
  0x2b   : > { %1039 = vmatprep.subr.bf16.mxu0 %v1082_v33 }
  0x2c   : > { %992 = vmatmul.mubr.msk.bf16.gmra.mrb[12].mxu0 %vm315_vm1, %v306_v31 }
  0x2e   : > { %1040 = vmatpush3.bf16.msra.mxu0 %v1082_v33 }
  0x2f   : > { %1041 = vmatprep.subr.bf16.mxu0 %v1083_v34 }
  0x32   : > { %1042 = vmatpush3.bf16.msra.mxu0 %v1083_v34 }
  0xe7   : > { %v981_v41 = vpop.f32.mrb[0].mxu0 }
  0xe8   : > { %v387_v42 = vadd.f32 %v981_v41, %v907_v40  ;;  %v378_v43 = vpop.f32.mrb[1].mxu0 }
  0xe9   : > { %v379_v44 = vadd.f32 %v907_v40, %v378_v43  ;;  %v982_v45 = vpop.f32.mrb[2].mxu0 }
  0xea   : > { %v390_v46 = vadd.f32 %v982_v45, %v907_v40  ;;  %v381_v47 = vpop.f32.mrb[3].mxu0  ;;  %v443_v49 = vmax.f32 %v387_v42, 0.0 }
  0xeb   : > { %v382_v48 = vadd.f32 %v907_v40, %v381_v47  ;;  %v441_v51 = vmax.f32 %v379_v44, 0.0 }
  0xec   : > { %v444_v50 = vmax.f32 %v390_v46, 0.0 }
  0xed   : > { %v442_v52 = vmax.f32 %v382_v48, 0.0 }
  0xee   : > { %v458_v53 = vpack.c.bf16 %v444_v50, %v443_v49 }
  0xef   : > { %v985_v54 = vpop.f32.mrb[4].mxu0  ;;  %v457_v55 = vpack.c.bf16 %v442_v52, %v441_v51 }
  0xf0   : > { %v403_v56 = vadd.f32 %v985_v54, %v907_v40  ;;  %v394_v57 = vpop.f32.mrb[5].mxu0 }
  0xf1   : > { %v395_v58 = vadd.f32 %v907_v40, %v394_v57  ;;  %v986_v59 = vpop.f32.mrb[6].mxu0  ;;  %1011 = vmatprep.mubr.bf16.mxu1 %v457_v55 }
  0xf2   : > { %v406_v60 = vadd.f32 %v986_v59, %v907_v40  ;;  %v397_v61 = vpop.f32.mrb[7].mxu0  ;;  %1012 = vmatmul.mubr.bf16.vlgmr.msra.gmra.mrb[0].mxu1 %v458_v53  ;;  %v447_v63 = vmax.f32 %v403_v56, 0.0 }
  0xf3   : > { %v398_v62 = vadd.f32 %v907_v40, %v397_v61  ;;  %v445_v1 = vmax.f32 %v395_v58, 0.0 }
  0xf4   : > { %v448_v0 = vmax.f32 %v406_v60, 0.0 }
  0xf5   : > { %v446_v2 = vmax.f32 %v398_v62, 0.0 }
  0xf6   : > { %v460_v3 = vpack.c.bf16 %v448_v0, %v447_v63 }
  0xf7   : > { %v459_v4 = vpack.c.bf16 %v446_v2, %v445_v1  ;;  %v989_v5 = vpop.f32.mrb[8].mxu0 }
  0xf8   : > { %v419_v6 = vadd.f32 %v989_v5, %v907_v40  ;;  %v410_v7 = vpop.f32.mrb[9].mxu0 }
  0xf9   : > { %v411_v8 = vadd.f32 %v907_v40, %v410_v7  ;;  %v990_v9 = vpop.f32.mrb[10].mxu0  ;;  %1015 = vmatprep.mubr.bf16.mxu1 %v459_v4 }
  0xfa   : > { %v422_v10 = vadd.f32 %v990_v9, %v907_v40  ;;  %v413_v11 = vpop.f32.mrb[11].mxu0  ;;  %1016 = vmatmul.mubr.bf16.gmra.mrb[4].mxu1 %v460_v3  ;;  %v451_v13 = vmax.f32 %v419_v6, 0.0 }
  0xfb   : > { %v414_v12 = vadd.f32 %v907_v40, %v413_v11  ;;  %v449_v15 = vmax.f32 %v411_v8, 0.0 }
  0xfc   : > { %v452_v14 = vmax.f32 %v422_v10, 0.0 }
  0xfd   : > { %v450_v16 = vmax.f32 %v414_v12, 0.0 }
  0xfe   : > { %v462_v17 = vpack.c.bf16 %v452_v14, %v451_v13 }
  0xff   : > { %v461_v18 = vpack.c.bf16 %v450_v16, %v449_v15  ;;  %v993_v19 = vpop.f32.mrb[12].mxu0 }
 0x100   : > { %v435_v20 = vadd.f32 %v993_v19, %v907_v40  ;;  %v426_v21 = vpop.f32.mrb[13].mxu0 }
 0x101   : > { %v427_v22 = vadd.f32 %v907_v40, %v426_v21  ;;  %v994_v23 = vpop.f32.mrb[14].mxu0  ;;  %1019 = vmatprep.mubr.bf16.mxu1 %v461_v18 }
 0x102   : > { %v438_v24 = vadd.f32 %v994_v23, %v907_v40  ;;  %v429_v25 = vpop.f32.mrb[15].mxu0  ;;  %1020 = vmatmul.mubr.bf16.gmra.mrb[8].mxu1 %v462_v17  ;;  %v455_v27 = vmax.f32 %v435_v20, 0.0 }
 0x103   : > { %v430_v26 = vadd.f32 %v907_v40, %v429_v25  ;;  %v453_v29 = vmax.f32 %v427_v22, 0.0 }
 0x104   : > { %v456_v28 = vmax.f32 %v438_v24, 0.0 }
 0x105   : > { %v454_v30 = vmax.f32 %v430_v26, 0.0 }
 0x106   : > { %v464_v31 = vpack.c.bf16 %v456_v28, %v455_v27  ;;  %v925_v28 = vld [vmem:[%s1282_s6] ss:$0 sm:$0xff] }
 0x107   : > { %v463_v32 = vpack.c.bf16 %v454_v30, %v453_v29 }
 0x109   : > { %1023 = vmatprep.mubr.bf16.mxu1 %v463_v32 }
 0x10a   : > { %1024 = vmatmul.mubr.bf16.gmra.mrb[12].mxu1 %v464_v31 }
 0x1c5   : > { %v1013_v36 = vpop.f32.mrb[0].mxu1 }
 0x1c6   : > { %v579_v37 = vadd.f32 %v1013_v36, %v916_v35  ;;  %v570_v38 = vpop.f32.mrb[1].mxu1 }
 0x1c7   : > { %v571_v39 = vadd.f32 %v916_v35, %v570_v38  ;;  %v1014_v40 = vpop.f32.mrb[2].mxu1 }
 0x1c8   : > { %v582_v41 = vadd.f32 %v1014_v40, %v916_v35  ;;  %v573_v42 = vpop.f32.mrb[3].mxu1  ;;  %v635_v44 = vmax.f32 %v579_v37, 0.0 }
 0x1c9   : > { %v574_v43 = vadd.f32 %v916_v35, %v573_v42  ;;  %v633_v46 = vmax.f32 %v571_v39, 0.0 }
 0x1ca   : > { %v636_v45 = vmax.f32 %v582_v41, 0.0 }
 0x1cb   : > { %v634_v47 = vmax.f32 %v574_v43, 0.0 }
 0x1cc   : > { %v650_v48 = vpack.c.bf16 %v636_v45, %v635_v44 }
 0x1cd   : > { %v649_v49 = vpack.c.bf16 %v634_v47, %v633_v46  ;;  %v1017_v50 = vpop.f32.mrb[4].mxu1 }
 0x1ce   : > { %v595_v51 = vadd.f32 %v1017_v50, %v916_v35  ;;  %v586_v52 = vpop.f32.mrb[5].mxu1 }
 0x1cf   : > { %v587_v53 = vadd.f32 %v916_v35, %v586_v52  ;;  %v1018_v54 = vpop.f32.mrb[6].mxu1  ;;  %1043 = vmatprep.mubr.bf16.mxu0 %v649_v49 }
 0x1d0   : > { %v598_v55 = vadd.f32 %v1018_v54, %v916_v35  ;;  %v589_v56 = vpop.f32.mrb[7].mxu1  ;;  %1044 = vmatmul.mubr.bf16.vlgmr.msra.gmra.mrb[16].mxu0 %v650_v48  ;;  %v639_v58 = vmax.f32 %v595_v51, 0.0 }
 0x1d1   : > { %v590_v57 = vadd.f32 %v916_v35, %v589_v56  ;;  %v637_v60 = vmax.f32 %v587_v53, 0.0 }
 0x1d2   : > { %v640_v59 = vmax.f32 %v598_v55, 0.0 }
 0x1d3   : > { %v638_v61 = vmax.f32 %v590_v57, 0.0 }
 0x1d4   : > { %v652_v62 = vpack.c.bf16 %v640_v59, %v639_v58 }
 0x1d5   : > { %v651_v63 = vpack.c.bf16 %v638_v61, %v637_v60  ;;  %v1021_v0 = vpop.f32.mrb[8].mxu1 }
 0x1d6   : > { %v611_v1 = vadd.f32 %v1021_v0, %v916_v35  ;;  %v602_v2 = vpop.f32.mrb[9].mxu1 }
 0x1d7   : > { %v603_v3 = vadd.f32 %v916_v35, %v602_v2  ;;  %v1022_v4 = vpop.f32.mrb[10].mxu1  ;;  %1047 = vmatprep.mubr.bf16.mxu0 %v651_v63 }
 0x1d8   : > { %v614_v5 = vadd.f32 %v1022_v4, %v916_v35  ;;  %v605_v6 = vpop.f32.mrb[11].mxu1  ;;  %1048 = vmatmul.mubr.bf16.gmra.mrb[20].mxu0 %v652_v62  ;;  %v643_v8 = vmax.f32 %v611_v1, 0.0 }
 0x1d9   : > { %v606_v7 = vadd.f32 %v916_v35, %v605_v6  ;;  %v641_v10 = vmax.f32 %v603_v3, 0.0 }
 0x1da   : > { %v644_v9 = vmax.f32 %v614_v5, 0.0 }
 0x1db   : > { %v642_v11 = vmax.f32 %v606_v7, 0.0 }
 0x1dc   : > { %v654_v12 = vpack.c.bf16 %v644_v9, %v643_v8 }
 0x1dd   : > { %v653_v13 = vpack.c.bf16 %v642_v11, %v641_v10  ;;  %v1025_v14 = vpop.f32.mrb[12].mxu1 }
 0x1de   : > { %v627_v15 = vadd.f32 %v1025_v14, %v916_v35  ;;  %v618_v16 = vpop.f32.mrb[13].mxu1 }
 0x1df   : > { %v619_v17 = vadd.f32 %v916_v35, %v618_v16  ;;  %v1026_v18 = vpop.f32.mrb[14].mxu1  ;;  %1051 = vmatprep.mubr.bf16.mxu0 %v653_v13 }
 0x1e0   : > { %v630_v19 = vadd.f32 %v1026_v18, %v916_v35  ;;  %v621_v20 = vpop.f32.mrb[15].mxu1  ;;  %1052 = vmatmul.mubr.bf16.gmra.mrb[24].mxu0 %v654_v12  ;;  %v647_v22 = vmax.f32 %v627_v15, 0.0 }
 0x1e1   : > { %v622_v21 = vadd.f32 %v916_v35, %v621_v20  ;;  %v645_v24 = vmax.f32 %v619_v17, 0.0 }
 0x1e2   : > { %v648_v23 = vmax.f32 %v630_v19, 0.0 }
 0x1e3   : > { %v646_v25 = vmax.f32 %v622_v21, 0.0 }
 0x1e4   : > { %v656_v26 = vpack.c.bf16 %v648_v23, %v647_v22 }
 0x1e5   : > { %v655_v27 = vpack.c.bf16 %v646_v25, %v645_v24 }
 0x1e7   : > { %1055 = vmatprep.mubr.bf16.mxu0 %v655_v27 }
 0x1e8   : > { %1056 = vmatmul.mubr.bf16.gmra.mrb[28].mxu0 %v656_v26 }
 0x2a3   : > { %v1045_v29 = vpop.f32.mrb[16].mxu0 }
 0x2a4   : > { %v771_v30 = vadd.f32 %v1045_v29, %v925_v28  ;;  %v762_v31 = vpop.f32.mrb[17].mxu0 }
 0x2a5   : > { %v763_v32 = vadd.f32 %v925_v28, %v762_v31  ;;  %v1046_v33 = vpop.f32.mrb[18].mxu0 }
 0x2a6   : > { %828 = vst.msk [vmem:[%s1239_s9 + $0x10] sm:$0xff] %vm825_vm2, %v771_v30  ;;  %v774_v34 = vadd.f32 %v1046_v33, %v925_v28  ;;  %v765_v35 = vpop.f32.mrb[19].mxu0 }
 0x2a7   : > { %826 = vst.msk [vmem:[%s1239_s9] sm:$0xff] %vm825_vm2, %v763_v32  ;;  %v766_v36 = vadd.f32 %v925_v28, %v765_v35 }
 0x2a8   : > { %829 = vst.msk [vmem:[%s1239_s9 + $0x18] sm:$0xff] %vm825_vm2, %v774_v34 }
 0x2a9   : > { %827 = vst.msk [vmem:[%s1239_s9 + $0x8] sm:$0xff] %vm825_vm2, %v766_v36 }
 0x2ab   : > { %v1049_v37 = vpop.f32.mrb[20].mxu0 }
 0x2ac   : > { %v787_v38 = vadd.f32 %v1049_v37, %v925_v28  ;;  %v778_v39 = vpop.f32.mrb[21].mxu0 }
 0x2ad   : > { %v779_v40 = vadd.f32 %v925_v28, %v778_v39  ;;  %v1050_v41 = vpop.f32.mrb[22].mxu0 }
 0x2ae   : > { %832 = vst.msk [vmem:[%s1239_s9 + $0x30] sm:$0xff] %vm825_vm2, %v787_v38  ;;  %v790_v42 = vadd.f32 %v1050_v41, %v925_v28  ;;  %v781_v43 = vpop.f32.mrb[23].mxu0 }
 0x2af   : > { %830 = vst.msk [vmem:[%s1239_s9 + $0x20] sm:$0xff] %vm825_vm2, %v779_v40  ;;  %v782_v44 = vadd.f32 %v925_v28, %v781_v43 }
 0x2b0   : > { %833 = vst.msk [vmem:[%s1239_s9 + $0x38] sm:$0xff] %vm825_vm2, %v790_v42 }
 0x2b1   : > { %831 = vst.msk [vmem:[%s1239_s9 + $0x28] sm:$0xff] %vm825_vm2, %v782_v44 }
 0x2b3   : > { %v1053_v45 = vpop.f32.mrb[24].mxu0 }
 0x2b4   : > { %v803_v46 = vadd.f32 %v1053_v45, %v925_v28  ;;  %v794_v47 = vpop.f32.mrb[25].mxu0 }
 0x2b5   : > { %v795_v48 = vadd.f32 %v925_v28, %v794_v47  ;;  %v1054_v49 = vpop.f32.mrb[26].mxu0 }
 0x2b6   : > { %836 = vst.msk [vmem:[%s1239_s9 + $0x50] sm:$0xff] %vm825_vm2, %v803_v46  ;;  %v806_v50 = vadd.f32 %v1054_v49, %v925_v28  ;;  %v797_v51 = vpop.f32.mrb[27].mxu0 }
 0x2b7   : > { %834 = vst.msk [vmem:[%s1239_s9 + $0x40] sm:$0xff] %vm825_vm2, %v795_v48  ;;  %v798_v52 = vadd.f32 %v925_v28, %v797_v51 }
 0x2b8   : > { %837 = vst.msk [vmem:[%s1239_s9 + $0x58] sm:$0xff] %vm825_vm2, %v806_v50 }
 0x2b9   : > { %835 = vst.msk [vmem:[%s1239_s9 + $0x48] sm:$0xff] %vm825_vm2, %v798_v52 }
 0x2bb   : > { %v1057_v53 = vpop.f32.mrb[28].mxu0 }
 0x2bc   : > { %v819_v54 = vadd.f32 %v1057_v53, %v925_v28  ;;  %v810_v55 = vpop.f32.mrb[29].mxu0 }
 0x2bd   : > { %v811_v56 = vadd.f32 %v925_v28, %v810_v55  ;;  %v1058_v57 = vpop.f32.mrb[30].mxu0 }
 0x2be   : > { %840 = vst.msk [vmem:[%s1239_s9 + $0x70] sm:$0xff] %vm825_vm2, %v819_v54  ;;  %v822_v58 = vadd.f32 %v1058_v57, %v925_v28  ;;  %v813_v59 = vpop.f32.mrb[31].mxu0 }
 0x2bf   : > { %838 = vst.msk [vmem:[%s1239_s9 + $0x60] sm:$0xff] %vm825_vm2, %v811_v56  ;;  %v814_v60 = vadd.f32 %v925_v28, %v813_v59 }
 0x2c0   : > { %841 = vst.msk [vmem:[%s1239_s9 + $0x78] sm:$0xff] %vm825_vm2, %v822_v58 }
 0x2c1   : > { %839 = vst.msk [vmem:[%s1239_s9 + $0x68] sm:$0xff] %vm825_vm2, %v814_v60 }
 0x2c2 PF: > { %s17_s24 = sadd.s32 1, %s1090_s24  }
 0x2c3   : > { %p14_p4 = scmp.ge.s32.totalorder %s17_s24, 4  }
 0x2c5   :  { %16 = sbr.rel (!%p14_p4) target bundleno = 1 (0x1), region = 78 }

</bundles_post_ra>
